<compile_context>
chip_gen: v5e
topology: v5e:2x2
jax: 0.10.0
libtpu: 0.0.40
codegen_flags: <defaults>
</compile_context>

<pallas_src>
import functools

import jax
import jax.numpy as jnp
from jax import lax
from jax.experimental import pallas as pl
from jax.experimental.pallas import tpu as pltpu


def _layer_norm(x, gamma, beta, eps=1e-5):
    mu = jnp.mean(x, axis=-1, keepdims=True)
    var = jnp.mean((x - mu) ** 2, axis=-1, keepdims=True)
    return (x - mu) * lax.rsqrt(var + eps) * gamma + beta


def _encoder_layer_kernel(
    x_ref, mask_ref,
    wq_ref, bq_ref, wk_ref, bk_ref, wv_ref, bv_ref, wo_ref, bo_ref,
    g1_ref, be1_ref,
    w1_ref, b1_ref, w2_ref, b2_ref,
    g2_ref, be2_ref,
    out_ref,
    k_sc, v_sc, q_sc, ctx_sc,
    *, num_heads: int, q_tile: int,
):
    D = x_ref.shape[2]
    d_k = D // num_heads
    scale = 1.0 / (float(d_k) ** 0.5)
    cdt = x_ref.dtype  # MXU operand dtype (bf16 in production, f32 for checks)

    i = pl.program_id(1)

    # ---- K/V projection: once per batch element, cached in VMEM scratch ----
    @pl.when(i == 0)
    def _():
        x_kv = x_ref[0]                                             # (S_pad, D)
        k_sc[...] = (jnp.dot(x_kv, wk_ref[...],
                             preferred_element_type=jnp.float32)
                     + bk_ref[...]).astype(cdt)
        v_sc[...] = (jnp.dot(x_kv, wv_ref[...],
                             preferred_element_type=jnp.float32)
                     + bv_ref[...]).astype(cdt)

    # ---- Q projection for this query tile only ----
    q_start = pl.multiple_of(i * q_tile, q_tile)
    x_q = x_ref[0, pl.ds(q_start, q_tile), :]                       # (tS, D)
    q = jnp.dot(x_q, wq_ref[...], preferred_element_type=jnp.float32) + bq_ref[...]
    q_sc[...] = (q * scale).astype(cdt)

    mask = mask_ref[0].astype(jnp.float32)                          # (tS, S_pad)

    # ---- per-head attention, contexts written into a (tS, D) VMEM scratch ----
    contract_last = (((1,), (1,)), ((), ()))  # q @ k^T without materializing k.T
    for h in range(num_heads):
        lo = h * d_k
        qh = q_sc[:, lo:lo + d_k]                                   # (tS, d_k)
        kh = k_sc[:, lo:lo + d_k]                                   # (S_pad, d_k)
        vh = v_sc[:, lo:lo + d_k]                                   # (S_pad, d_k)

        s = lax.dot_general(qh, kh, contract_last,
                            preferred_element_type=jnp.float32) + mask
        m = jnp.max(s, axis=-1, keepdims=True)
        p = jnp.exp(s - m)
        # TODO(synk): use an exact divide if strict SDPA parity is required.
        p = p * pl.reciprocal(jnp.sum(p, axis=-1, keepdims=True), approx=True)

        ctx_sc[:, lo:lo + d_k] = jnp.dot(
            p.astype(cdt), vh, preferred_element_type=jnp.float32).astype(cdt)

    # ---- single full-depth (K = D) output projection ----
    attn_out = jnp.dot(ctx_sc[...], wo_ref[...],
                       preferred_element_type=jnp.float32) + bo_ref[...]

    # ---- residual + norm1 (f32) ----
    x1 = _layer_norm(x_q.astype(jnp.float32) + attn_out, g1_ref[...], be1_ref[...])

    # ---- feed forward ----
    h1 = jnp.dot(x1.astype(cdt), w1_ref[...],
                 preferred_element_type=jnp.float32) + b1_ref[...]
    h1 = jnp.maximum(h1, 0.0)
    ff = jnp.dot(h1.astype(cdt), w2_ref[...],
                 preferred_element_type=jnp.float32) + b2_ref[...]

    # ---- residual + norm2 (f32) ----
    y = _layer_norm(x1 + ff, g2_ref[...], be2_ref[...])
    out_ref[0] = y.astype(out_ref.dtype)


def bayes_encoder_layer(x, mask, params, *, num_heads, q_tile=None,
                        compute_dtype=jnp.bfloat16):
    B, S, D = x.shape
    d_ff = params["w1"].shape[1]
    assert D % num_heads == 0
    compute_dtype = jnp.dtype(compute_dtype)
    out_dtype = x.dtype

    # ---- query tiling (pad S so the kernel always tiles cleanly) ----
    if q_tile is None:
        q_tile = S if S <= 512 else 256
    n_q = pl.cdiv(S, q_tile)
    S_pad = n_q * q_tile
    pad = S_pad - S

    # ---- normalize mask to (Bm, S, S), Bm in {1, B}; keep it shared if possible ----
    if mask.ndim == 2:
        mask = mask[None]
    Bm = mask.shape[0]
    assert Bm in (1, B) and mask.shape[1:] == (S, S)

    xc = x.astype(compute_dtype)
    maskc = mask.astype(compute_dtype)
    if pad:
        xc = jnp.pad(xc, ((0, 0), (0, pad), (0, 0)))
        # padded keys: -1e9 (excluded); padded queries: 0 (rows sliced off below)
        maskc = jnp.pad(maskc, ((0, 0), (0, 0), (0, pad)), constant_values=-1e9)
        maskc = jnp.pad(maskc, ((0, 0), (0, pad), (0, 0)))

    # ---- parameters: matmul weights in compute dtype, small vectors in f32 ----
    def wcast(n):
        return params[n].astype(compute_dtype)

    def fcast(n):
        return params[n].astype(jnp.float32)

    param_list = [
        wcast("wq"), fcast("bq"), wcast("wk"), fcast("bk"),
        wcast("wv"), fcast("bv"), wcast("wo"), fcast("bo"),
        fcast("ln1_g"), fcast("ln1_b"),
        wcast("w1"), fcast("b1"), wcast("w2"), fcast("b2"),
        fcast("ln2_g"), fcast("ln2_b"),
    ]

    # ---- weight specs: constant block index; single-buffer when they are big ----
    w_bytes = sum(int(p.size) * p.dtype.itemsize for p in param_list)
    single_buffer = w_bytes >= (8 << 20)  # only worth it (and exercised) at scale

    def const_spec(shape):
        nd = len(shape)
        idx = lambda b, i, _n=nd: (0,) * _n
        if single_buffer:
            try:
                return pl.BlockSpec(shape, idx, pipeline_mode=pl.Buffered(1)), 1
            except Exception:  # older API without pipeline_mode
                pass
        return pl.BlockSpec(shape, idx), 2

    specs_bufs = [const_spec(p.shape) for p in param_list]
    weight_specs = [s for s, _ in specs_bufs]
    w_buf = max(b for _, b in specs_bufs)

    mask_map = (lambda b, i: (b, i, 0)) if Bm == B else (lambda b, i: (0, i, 0))

    in_specs = [
        pl.BlockSpec((1, S_pad, D), lambda b, i: (b, 0, 0)),       # x (full S for K/V)
        pl.BlockSpec((1, q_tile, S_pad), mask_map),                # additive mask tile
        *weight_specs,
    ]
    out_spec = pl.BlockSpec((1, q_tile, D), lambda b, i: (b, i, 0))

    scratch_shapes = [
        pltpu.VMEM((S_pad, D), compute_dtype),    # cached K
        pltpu.VMEM((S_pad, D), compute_dtype),    # cached V
        pltpu.VMEM((q_tile, D), compute_dtype),   # scaled Q tile
        pltpu.VMEM((q_tile, D), compute_dtype),   # per-head contexts
    ]

    # ---- generation-aware scoped-VMEM budget ----
    try:
        vmem_cap = int(pltpu.get_tpu_info().vmem_capacity_bytes)
    except Exception:
        vmem_cap = 64 << 20  # conservative (v7x per-TC)
    cds = compute_dtype.itemsize
    tiles = 2 * (S_pad * D * cds
                 + q_tile * S_pad * maskc.dtype.itemsize
                 + q_tile * D * jnp.dtype(out_dtype).itemsize)
    scratch_b = (2 * S_pad * D + 2 * q_tile * D) * cds
    live_f32 = (2 * q_tile * S_pad + q_tile * d_ff + 6 * q_tile * D) * 4
    est = w_buf * w_bytes + tiles + scratch_b + live_f32
    vmem_limit = int(min(max(int(est * 1.25) + (8 << 20), 32 << 20),
                         vmem_cap - (4 << 20)))

    kernel = functools.partial(
        _encoder_layer_kernel, num_heads=num_heads, q_tile=q_tile)

    out = pl.pallas_call(
        kernel,
        out_shape=jax.ShapeDtypeStruct((B, S_pad, D), out_dtype),
        grid_spec=pltpu.PrefetchScalarGridSpec(
            num_scalar_prefetch=0,
            grid=(B, n_q),
            in_specs=in_specs,
            out_specs=out_spec,
            scratch_shapes=scratch_shapes,
        ),
        compiler_params=pltpu.CompilerParams(
            # q-tile axis must be "arbitrary": the K/V scratch is carried across it.
            dimension_semantics=("parallel", "arbitrary"),
            vmem_limit_bytes=vmem_limit,
        ),
    )(xc, maskc, *param_list)

    return out[:, :S, :] if pad else out


def init_params(key, d_model, d_ff):
    keys = jax.random.split(key, 8)
    s = 0.02
    return {
        "wq": jax.random.normal(keys[0], (d_model, d_model), jnp.float32) * s,
        "bq": jnp.zeros((1, d_model), jnp.float32),
        "wk": jax.random.normal(keys[1], (d_model, d_model), jnp.float32) * s,
        "bk": jnp.zeros((1, d_model), jnp.float32),
        "wv": jax.random.normal(keys[2], (d_model, d_model), jnp.float32) * s,
        "bv": jnp.zeros((1, d_model), jnp.float32),
        "wo": jax.random.normal(keys[3], (d_model, d_model), jnp.float32) * s,
        "bo": jax.random.normal(keys[4], (1, d_model), jnp.float32) * s,
        "ln1_g": jnp.ones((1, d_model), jnp.float32),
        "ln1_b": jnp.zeros((1, d_model), jnp.float32),
        "w1": jax.random.normal(keys[5], (d_model, d_ff), jnp.float32) * s,
        "b1": jax.random.normal(keys[6], (1, d_ff), jnp.float32) * s,
        "w2": jax.random.normal(keys[7], (d_ff, d_model), jnp.float32) * s,
        "b2": jnp.zeros((1, d_model), jnp.float32),
        "ln2_g": jnp.ones((1, d_model), jnp.float32),
        "ln2_b": jnp.zeros((1, d_model), jnp.float32),
    }


def _reference(x, mask, params, num_heads):
    """Pure-JAX reference (mirrors the torch module, eval mode)."""
    B, S, D = x.shape
    d_k = D // num_heads
    q = x @ params["wq"] + params["bq"]
    k = x @ params["wk"] + params["bk"]
    v = x @ params["wv"] + params["bv"]

    def split(t):
        return t.reshape(B, S, num_heads, d_k).transpose(0, 2, 1, 3)

    qh, kh, vh = split(q), split(k), split(v)
    scores = jnp.einsum("bhqd,bhkd->bhqk", qh, kh) / (d_k ** 0.5)
    m = mask if mask.ndim == 3 else mask[None]
    scores = scores + m[:, None, :, :]
    p = jax.nn.softmax(scores, axis=-1)
    ctx = jnp.einsum("bhqk,bhkd->bhqd", p, vh)
    ctx = ctx.transpose(0, 2, 1, 3).reshape(B, S, D)
    attn = ctx @ params["wo"] + params["bo"]

    def ln(t, g, b):
        mu = jnp.mean(t, axis=-1, keepdims=True)
        var = jnp.mean((t - mu) ** 2, axis=-1, keepdims=True)
        return (t - mu) / jnp.sqrt(var + 1e-5) * g + b

    x1 = ln(x + attn, params["ln1_g"], params["ln1_b"])
    h1 = jnp.maximum(x1 @ params["w1"] + params["b1"], 0.0)
    ff = h1 @ params["w2"] + params["b2"]
    return ln(x1 + ff, params["ln2_g"], params["ln2_b"])


if __name__ == "__main__":
    key = jax.random.PRNGKey(0)

    # ---- test 1: small shapes, f32 compute, shared (S, S) causal mask ----
    B, S, D, H, DFF = 2, 8, 32, 4, 64
    k1, k2, key = jax.random.split(key, 3)
    x = jax.random.normal(k1, (B, S, D), jnp.float32)
    causal = jnp.tril(jnp.ones((S, S), jnp.float32))
    mask2d = jnp.where(causal > 0, 0.0, -1e9)
    params = init_params(k2, D, DFF)

    out = bayes_encoder_layer(x, mask2d, params, num_heads=H,
                              compute_dtype=jnp.float32)
    out = jax.block_until_ready(out)
    assert out.shape == (B, S, D)
    assert bool(jnp.all(jnp.isfinite(out)))
    ref = _reference(x, mask2d, params, H)
    assert bool(jnp.max(jnp.abs(out - ref)) < 2e-2), "f32 path mismatch"

    # ---- test 2: multi-tile, non-aligned S (exercises q-tiling + padding) ----
    B2, S2, D2, H2, DFF2 = 1, 600, 64, 4, 128
    k3, k4, key = jax.random.split(key, 3)
    x2 = jax.random.normal(k3, (B2, S2, D2), jnp.float32)
    c2 = jnp.tril(jnp.ones((S2, S2), jnp.float32))
    mask2 = jnp.where(c2 > 0, 0.0, -1e9)
    params2 = init_params(k4, D2, DFF2)
    out2 = bayes_encoder_layer(x2, mask2, params2, num_heads=H2,
                               compute_dtype=jnp.float32)
    out2 = jax.block_until_ready(out2)
    assert out2.shape == (B2, S2, D2)
    ref2 = _reference(x2, mask2, params2, H2)
    assert bool(jnp.max(jnp.abs(out2 - ref2)) < 2e-2), "tiled/padded path mismatch"

    # ---- test 3: bf16 MXU operands (production default) ----
    out_bf = bayes_encoder_layer(x, mask2d, params, num_heads=H)  # bf16 default
    out_bf = jax.block_until_ready(out_bf)
    assert out_bf.shape == (B, S, D)
    assert bool(jnp.all(jnp.isfinite(out_bf)))
    assert bool(jnp.max(jnp.abs(out_bf - ref)) < 2e-1), "bf16 deviation too large"

    print("KERNEL_OK")
</pallas_src>

<mosaic_0001>
module attributes {stable_mosaic.version = 11 : i64} {
  func.func @_encoder_layer_kernel(%arg0: i32, %arg1: i32, %arg2: memref<1x8x32xf32, #tpu.memory_space<vmem>>, %arg3: memref<1x8x8xf32, #tpu.memory_space<vmem>>, %arg4: memref<32x32xf32, #tpu.memory_space<vmem>>, %arg5: memref<1x32xf32, #tpu.memory_space<vmem>>, %arg6: memref<32x32xf32, #tpu.memory_space<vmem>>, %arg7: memref<1x32xf32, #tpu.memory_space<vmem>>, %arg8: memref<32x32xf32, #tpu.memory_space<vmem>>, %arg9: memref<1x32xf32, #tpu.memory_space<vmem>>, %arg10: memref<32x32xf32, #tpu.memory_space<vmem>>, %arg11: memref<1x32xf32, #tpu.memory_space<vmem>>, %arg12: memref<1x32xf32, #tpu.memory_space<vmem>>, %arg13: memref<1x32xf32, #tpu.memory_space<vmem>>, %arg14: memref<32x64xf32, #tpu.memory_space<vmem>>, %arg15: memref<1x64xf32, #tpu.memory_space<vmem>>, %arg16: memref<64x32xf32, #tpu.memory_space<vmem>>, %arg17: memref<1x32xf32, #tpu.memory_space<vmem>>, %arg18: memref<1x32xf32, #tpu.memory_space<vmem>>, %arg19: memref<1x32xf32, #tpu.memory_space<vmem>>, %arg20: memref<1x8x32xf32, #tpu.memory_space<vmem>>, %arg21: memref<8x32xf32, #tpu.memory_space<vmem>>, %arg22: memref<8x32xf32, #tpu.memory_space<vmem>>, %arg23: memref<8x32xf32, #tpu.memory_space<vmem>>, %arg24: memref<8x32xf32, #tpu.memory_space<vmem>>) attributes {dimension_semantics = [#tpu.dimension_semantics<parallel>, #tpu.dimension_semantics<arbitrary>], iteration_bounds = array<i64: 2, 1>, scalar_prefetch = 0 : i64, scratch_operands = 4 : i64, tpu.core_type = #tpu.core_type<tc>, window_params = [{transform_indices = @transform_0, window_bounds = array<i64: 1, 8, 32>}, {transform_indices = @transform_1, window_bounds = array<i64: 1, 8, 8>}, {pipeline_mode = #tpu.pipeline_mode<synchronous>, transform_indices = @transform_2, window_bounds = array<i64: 32, 32>}, {pipeline_mode = #tpu.pipeline_mode<synchronous>, transform_indices = @transform_3, window_bounds = array<i64: 1, 32>}, {pipeline_mode = #tpu.pipeline_mode<synchronous>, transform_indices = @transform_4, window_bounds = array<i64: 32, 32>}, {pipeline_mode = #tpu.pipeline_mode<synchronous>, transform_indices = @transform_5, window_bounds = array<i64: 1, 32>}, {pipeline_mode = #tpu.pipeline_mode<synchronous>, transform_indices = @transform_6, window_bounds = array<i64: 32, 32>}, {pipeline_mode = #tpu.pipeline_mode<synchronous>, transform_indices = @transform_7, window_bounds = array<i64: 1, 32>}, {pipeline_mode = #tpu.pipeline_mode<synchronous>, transform_indices = @transform_8, window_bounds = array<i64: 32, 32>}, {pipeline_mode = #tpu.pipeline_mode<synchronous>, transform_indices = @transform_9, window_bounds = array<i64: 1, 32>}, {pipeline_mode = #tpu.pipeline_mode<synchronous>, transform_indices = @transform_10, window_bounds = array<i64: 1, 32>}, {pipeline_mode = #tpu.pipeline_mode<synchronous>, transform_indices = @transform_11, window_bounds = array<i64: 1, 32>}, {pipeline_mode = #tpu.pipeline_mode<synchronous>, transform_indices = @transform_12, window_bounds = array<i64: 32, 64>}, {pipeline_mode = #tpu.pipeline_mode<synchronous>, transform_indices = @transform_13, window_bounds = array<i64: 1, 64>}, {pipeline_mode = #tpu.pipeline_mode<synchronous>, transform_indices = @transform_14, window_bounds = array<i64: 64, 32>}, {pipeline_mode = #tpu.pipeline_mode<synchronous>, transform_indices = @transform_15, window_bounds = array<i64: 1, 32>}, {pipeline_mode = #tpu.pipeline_mode<synchronous>, transform_indices = @transform_16, window_bounds = array<i64: 1, 32>}, {pipeline_mode = #tpu.pipeline_mode<synchronous>, transform_indices = @transform_17, window_bounds = array<i64: 1, 32>}, {transform_indices = @transform_18, window_bounds = array<i64: 1, 8, 32>}]} {
    %c0_i32 = arith.constant 0 : i32
    %0 = arith.cmpi eq, %arg1, %c0_i32 : i32
    %1 = arith.extui %0 : i1 to i32
    %c0_i32_0 = arith.constant 0 : i32
    %2 = arith.cmpi ne, %1, %c0_i32_0 : i32
    scf.if %2 {
      %c0_96 = arith.constant 0 : index
      %c0_97 = arith.constant 0 : index
      %c0_98 = arith.constant 0 : index
      %157 = vector.load %arg2[%c0_96, %c0_97, %c0_98] : memref<1x8x32xf32, #tpu.memory_space<vmem>>, vector<1x8x32xf32>
      %158 = vector.shape_cast %157 : vector<1x8x32xf32> to vector<8x32xf32>
      %c0_99 = arith.constant 0 : index
      %c0_100 = arith.constant 0 : index
      %159 = vector.load %arg6[%c0_99, %c0_100] : memref<32x32xf32, #tpu.memory_space<vmem>>, vector<32x32xf32>
      %cst_101 = arith.constant dense<0.000000e+00> : vector<8x32xf32>
      %160 = tpu.matmul %158, %159, %cst_101 {dimension_numbers = #tpu.dot_dimension_numbers<[1], [0], [0], [1], [0, 0, 1, 1], [], []>} : vector<8x32xf32>, vector<32x32xf32>, vector<8x32xf32> -> vector<8x32xf32>
      %c0_102 = arith.constant 0 : index
      %c0_103 = arith.constant 0 : index
      %161 = vector.load %arg7[%c0_102, %c0_103] : memref<1x32xf32, #tpu.memory_space<vmem>>, vector<1x32xf32>
      %162 = vector.broadcast %161 : vector<1x32xf32> to vector<8x32xf32>
      %163 = arith.addf %160, %162 : vector<8x32xf32>
      %c0_104 = arith.constant 0 : index
      %c0_105 = arith.constant 0 : index
      %164 = vector.load %arg21[%c0_104, %c0_105] : memref<8x32xf32, #tpu.memory_space<vmem>>, vector<8x32xf32>
      tpu.vector_store %arg21[%c0_104, %c0_105], %163 {strides = array<i32>} : memref<8x32xf32, #tpu.memory_space<vmem>>, vector<8x32xf32>,
      %c0_106 = arith.constant 0 : index
      %c0_107 = arith.constant 0 : index
      %165 = vector.load %arg8[%c0_106, %c0_107] : memref<32x32xf32, #tpu.memory_space<vmem>>, vector<32x32xf32>
      %cst_108 = arith.constant dense<0.000000e+00> : vector<8x32xf32>
      %166 = tpu.matmul %158, %165, %cst_108 {dimension_numbers = #tpu.dot_dimension_numbers<[1], [0], [0], [1], [0, 0, 1, 1], [], []>} : vector<8x32xf32>, vector<32x32xf32>, vector<8x32xf32> -> vector<8x32xf32>
      %c0_109 = arith.constant 0 : index
      %c0_110 = arith.constant 0 : index
      %167 = vector.load %arg9[%c0_109, %c0_110] : memref<1x32xf32, #tpu.memory_space<vmem>>, vector<1x32xf32>
      %168 = vector.broadcast %167 : vector<1x32xf32> to vector<8x32xf32>
      %169 = arith.addf %166, %168 : vector<8x32xf32>
      %c0_111 = arith.constant 0 : index
      %c0_112 = arith.constant 0 : index
      %170 = vector.load %arg22[%c0_111, %c0_112] : memref<8x32xf32, #tpu.memory_space<vmem>>, vector<8x32xf32>
      tpu.vector_store %arg22[%c0_111, %c0_112], %169 {strides = array<i32>} : memref<8x32xf32, #tpu.memory_space<vmem>>, vector<8x32xf32>,
    } else {
    }
    %c8_i32 = arith.constant 8 : i32
    %3 = arith.muli %arg1, %c8_i32 : i32
    %4 = tpu.assume_multiple %3, 8 : i32
    %c0 = arith.constant 0 : index
    %5 = arith.index_cast %4 : i32 to index
    %c0_1 = arith.constant 0 : index
    %6 = vector.load %arg2[%c0, %5, %c0_1] : memref<1x8x32xf32, #tpu.memory_space<vmem>>, vector<1x8x32xf32>
    %7 = vector.shape_cast %6 : vector<1x8x32xf32> to vector<8x32xf32>
    %c0_2 = arith.constant 0 : index
    %c0_3 = arith.constant 0 : index
    %8 = vector.load %arg4[%c0_2, %c0_3] : memref<32x32xf32, #tpu.memory_space<vmem>>, vector<32x32xf32>
    %cst = arith.constant dense<0.000000e+00> : vector<8x32xf32>
    %9 = tpu.matmul %7, %8, %cst {dimension_numbers = #tpu.dot_dimension_numbers<[1], [0], [0], [1], [0, 0, 1, 1], [], []>} : vector<8x32xf32>, vector<32x32xf32>, vector<8x32xf32> -> vector<8x32xf32>
    %c0_4 = arith.constant 0 : index
    %c0_5 = arith.constant 0 : index
    %10 = vector.load %arg5[%c0_4, %c0_5] : memref<1x32xf32, #tpu.memory_space<vmem>>, vector<1x32xf32>
    %11 = vector.broadcast %10 : vector<1x32xf32> to vector<8x32xf32>
    %12 = arith.addf %9, %11 : vector<8x32xf32>
    %cst_6 = arith.constant 0.353553385 : f32
    %13 = vector.broadcast %cst_6 : f32 to vector<8x32xf32>
    %14 = arith.mulf %12, %13 : vector<8x32xf32>
    %c0_7 = arith.constant 0 : index
    %c0_8 = arith.constant 0 : index
    %15 = vector.load %arg23[%c0_7, %c0_8] : memref<8x32xf32, #tpu.memory_space<vmem>>, vector<8x32xf32>
    tpu.vector_store %arg23[%c0_7, %c0_8], %14 {strides = array<i32>} : memref<8x32xf32, #tpu.memory_space<vmem>>, vector<8x32xf32>,
    %c0_9 = arith.constant 0 : index
    %c0_10 = arith.constant 0 : index
    %c0_11 = arith.constant 0 : index
    %16 = vector.load %arg3[%c0_9, %c0_10, %c0_11] : memref<1x8x8xf32, #tpu.memory_space<vmem>>, vector<1x8x8xf32>
    %17 = vector.shape_cast %16 : vector<1x8x8xf32> to vector<8x8xf32>
    %c0_12 = arith.constant 0 : index
    %c0_13 = arith.constant 0 : index
    %18 = vector.load %arg23[%c0_12, %c0_13] : memref<8x32xf32, #tpu.memory_space<vmem>>, vector<8x8xf32>
    %c0_14 = arith.constant 0 : index
    %c0_15 = arith.constant 0 : index
    %19 = vector.load %arg21[%c0_14, %c0_15] : memref<8x32xf32, #tpu.memory_space<vmem>>, vector<8x8xf32>
    %c0_16 = arith.constant 0 : index
    %c0_17 = arith.constant 0 : index
    %20 = vector.load %arg22[%c0_16, %c0_17] : memref<8x32xf32, #tpu.memory_space<vmem>>, vector<8x8xf32>
    %cst_18 = arith.constant dense<0.000000e+00> : vector<8x8xf32>
    %21 = tpu.matmul %18, %19, %cst_18 {dimension_numbers = #tpu.dot_dimension_numbers<[1], [1], [0], [0], [0, 0, 1, 0], [], []>} : vector<8x8xf32>, vector<8x8xf32>, vector<8x8xf32> -> vector<8x8xf32>
    %22 = arith.addf %21, %17 : vector<8x8xf32>
    %cst_19 = arith.constant dense<0xFF800000> : vector<8xf32>
    %23 = vector.multi_reduction <maximumf>, %22, %cst_19 [1] : vector<8x8xf32> to vector<8xf32>
    %24 = vector.shape_cast %23 : vector<8xf32> to vector<8x1xf32>
    %25 = vector.broadcast %24 : vector<8x1xf32> to vector<8x8xf32>
    %26 = arith.subf %22, %25 : vector<8x8xf32>
    %27 = math.exp %26 : vector<8x8xf32>
    %cst_20 = arith.constant dense<0.000000e+00> : vector<8xf32>
    %28 = vector.multi_reduction <add>, %27, %cst_20 [1] : vector<8x8xf32> to vector<8xf32>
    %29 = vector.shape_cast %28 : vector<8xf32> to vector<8x1xf32>
    %30 = tpu.reciprocal %29 {approx = true} : vector<8x1xf32> -> vector<8x1xf32>
    %31 = vector.broadcast %30 : vector<8x1xf32> to vector<8x8xf32>
    %32 = arith.mulf %27, %31 : vector<8x8xf32>
    %cst_21 = arith.constant dense<0.000000e+00> : vector<8x8xf32>
    %33 = tpu.matmul %32, %20, %cst_21 {dimension_numbers = #tpu.dot_dimension_numbers<[1], [0], [0], [1], [0, 0, 1, 1], [], []>} : vector<8x8xf32>, vector<8x8xf32>, vector<8x8xf32> -> vector<8x8xf32>
    %c0_22 = arith.constant 0 : index
    %c0_23 = arith.constant 0 : index
    %34 = vector.load %arg24[%c0_22, %c0_23] : memref<8x32xf32, #tpu.memory_space<vmem>>, vector<8x8xf32>
    tpu.vector_store %arg24[%c0_22, %c0_23], %33 {strides = array<i32>} : memref<8x32xf32, #tpu.memory_space<vmem>>, vector<8x8xf32>,
    %c0_24 = arith.constant 0 : index
    %c8 = arith.constant 8 : index
    %35 = vector.load %arg23[%c0_24, %c8] : memref<8x32xf32, #tpu.memory_space<vmem>>, vector<8x8xf32>
    %c0_25 = arith.constant 0 : index
    %c8_26 = arith.constant 8 : index
    %36 = vector.load %arg21[%c0_25, %c8_26] : memref<8x32xf32, #tpu.memory_space<vmem>>, vector<8x8xf32>
    %c0_27 = arith.constant 0 : index
    %c8_28 = arith.constant 8 : index
    %37 = vector.load %arg22[%c0_27, %c8_28] : memref<8x32xf32, #tpu.memory_space<vmem>>, vector<8x8xf32>
    %cst_29 = arith.constant dense<0.000000e+00> : vector<8x8xf32>
    %38 = tpu.matmul %35, %36, %cst_29 {dimension_numbers = #tpu.dot_dimension_numbers<[1], [1], [0], [0], [0, 0, 1, 0], [], []>} : vector<8x8xf32>, vector<8x8xf32>, vector<8x8xf32> -> vector<8x8xf32>
    %39 = arith.addf %38, %17 : vector<8x8xf32>
    %cst_30 = arith.constant dense<0xFF800000> : vector<8xf32>
    %40 = vector.multi_reduction <maximumf>, %39, %cst_30 [1] : vector<8x8xf32> to vector<8xf32>
    %41 = vector.shape_cast %40 : vector<8xf32> to vector<8x1xf32>
    %42 = vector.broadcast %41 : vector<8x1xf32> to vector<8x8xf32>
    %43 = arith.subf %39, %42 : vector<8x8xf32>
    %44 = math.exp %43 : vector<8x8xf32>
    %cst_31 = arith.constant dense<0.000000e+00> : vector<8xf32>
    %45 = vector.multi_reduction <add>, %44, %cst_31 [1] : vector<8x8xf32> to vector<8xf32>
    %46 = vector.shape_cast %45 : vector<8xf32> to vector<8x1xf32>
    %47 = tpu.reciprocal %46 {approx = true} : vector<8x1xf32> -> vector<8x1xf32>
    %48 = vector.broadcast %47 : vector<8x1xf32> to vector<8x8xf32>
    %49 = arith.mulf %44, %48 : vector<8x8xf32>
    %cst_32 = arith.constant dense<0.000000e+00> : vector<8x8xf32>
    %50 = tpu.matmul %49, %37, %cst_32 {dimension_numbers = #tpu.dot_dimension_numbers<[1], [0], [0], [1], [0, 0, 1, 1], [], []>} : vector<8x8xf32>, vector<8x8xf32>, vector<8x8xf32> -> vector<8x8xf32>
    %c0_33 = arith.constant 0 : index
    %c8_34 = arith.constant 8 : index
    %51 = vector.load %arg24[%c0_33, %c8_34] : memref<8x32xf32, #tpu.memory_space<vmem>>, vector<8x8xf32>
    tpu.vector_store %arg24[%c0_33, %c8_34], %50 {strides = array<i32>} : memref<8x32xf32, #tpu.memory_space<vmem>>, vector<8x8xf32>,
    %c0_35 = arith.constant 0 : index
    %c16 = arith.constant 16 : index
    %52 = vector.load %arg23[%c0_35, %c16] : memref<8x32xf32, #tpu.memory_space<vmem>>, vector<8x8xf32>
    %c0_36 = arith.constant 0 : index
    %c16_37 = arith.constant 16 : index
    %53 = vector.load %arg21[%c0_36, %c16_37] : memref<8x32xf32, #tpu.memory_space<vmem>>, vector<8x8xf32>
    %c0_38 = arith.constant 0 : index
    %c16_39 = arith.constant 16 : index
    %54 = vector.load %arg22[%c0_38, %c16_39] : memref<8x32xf32, #tpu.memory_space<vmem>>, vector<8x8xf32>
    %cst_40 = arith.constant dense<0.000000e+00> : vector<8x8xf32>
    %55 = tpu.matmul %52, %53, %cst_40 {dimension_numbers = #tpu.dot_dimension_numbers<[1], [1], [0], [0], [0, 0, 1, 0], [], []>} : vector<8x8xf32>, vector<8x8xf32>, vector<8x8xf32> -> vector<8x8xf32>
    %56 = arith.addf %55, %17 : vector<8x8xf32>
    %cst_41 = arith.constant dense<0xFF800000> : vector<8xf32>
    %57 = vector.multi_reduction <maximumf>, %56, %cst_41 [1] : vector<8x8xf32> to vector<8xf32>
    %58 = vector.shape_cast %57 : vector<8xf32> to vector<8x1xf32>
    %59 = vector.broadcast %58 : vector<8x1xf32> to vector<8x8xf32>
    %60 = arith.subf %56, %59 : vector<8x8xf32>
    %61 = math.exp %60 : vector<8x8xf32>
    %cst_42 = arith.constant dense<0.000000e+00> : vector<8xf32>
    %62 = vector.multi_reduction <add>, %61, %cst_42 [1] : vector<8x8xf32> to vector<8xf32>
    %63 = vector.shape_cast %62 : vector<8xf32> to vector<8x1xf32>
    %64 = tpu.reciprocal %63 {approx = true} : vector<8x1xf32> -> vector<8x1xf32>
    %65 = vector.broadcast %64 : vector<8x1xf32> to vector<8x8xf32>
    %66 = arith.mulf %61, %65 : vector<8x8xf32>
    %cst_43 = arith.constant dense<0.000000e+00> : vector<8x8xf32>
    %67 = tpu.matmul %66, %54, %cst_43 {dimension_numbers = #tpu.dot_dimension_numbers<[1], [0], [0], [1], [0, 0, 1, 1], [], []>} : vector<8x8xf32>, vector<8x8xf32>, vector<8x8xf32> -> vector<8x8xf32>
    %c0_44 = arith.constant 0 : index
    %c16_45 = arith.constant 16 : index
    %68 = vector.load %arg24[%c0_44, %c16_45] : memref<8x32xf32, #tpu.memory_space<vmem>>, vector<8x8xf32>
    tpu.vector_store %arg24[%c0_44, %c16_45], %67 {strides = array<i32>} : memref<8x32xf32, #tpu.memory_space<vmem>>, vector<8x8xf32>,
    %c0_46 = arith.constant 0 : index
    %c24 = arith.constant 24 : index
    %69 = vector.load %arg23[%c0_46, %c24] : memref<8x32xf32, #tpu.memory_space<vmem>>, vector<8x8xf32>
    %c0_47 = arith.constant 0 : index
    %c24_48 = arith.constant 24 : index
    %70 = vector.load %arg21[%c0_47, %c24_48] : memref<8x32xf32, #tpu.memory_space<vmem>>, vector<8x8xf32>
    %c0_49 = arith.constant 0 : index
    %c24_50 = arith.constant 24 : index
    %71 = vector.load %arg22[%c0_49, %c24_50] : memref<8x32xf32, #tpu.memory_space<vmem>>, vector<8x8xf32>
    %cst_51 = arith.constant dense<0.000000e+00> : vector<8x8xf32>
    %72 = tpu.matmul %69, %70, %cst_51 {dimension_numbers = #tpu.dot_dimension_numbers<[1], [1], [0], [0], [0, 0, 1, 0], [], []>} : vector<8x8xf32>, vector<8x8xf32>, vector<8x8xf32> -> vector<8x8xf32>
    %73 = arith.addf %72, %17 : vector<8x8xf32>
    %cst_52 = arith.constant dense<0xFF800000> : vector<8xf32>
    %74 = vector.multi_reduction <maximumf>, %73, %cst_52 [1] : vector<8x8xf32> to vector<8xf32>
    %75 = vector.shape_cast %74 : vector<8xf32> to vector<8x1xf32>
    %76 = vector.broadcast %75 : vector<8x1xf32> to vector<8x8xf32>
    %77 = arith.subf %73, %76 : vector<8x8xf32>
    %78 = math.exp %77 : vector<8x8xf32>
    %cst_53 = arith.constant dense<0.000000e+00> : vector<8xf32>
    %79 = vector.multi_reduction <add>, %78, %cst_53 [1] : vector<8x8xf32> to vector<8xf32>
    %80 = vector.shape_cast %79 : vector<8xf32> to vector<8x1xf32>
    %81 = tpu.reciprocal %80 {approx = true} : vector<8x1xf32> -> vector<8x1xf32>
    %82 = vector.broadcast %81 : vector<8x1xf32> to vector<8x8xf32>
    %83 = arith.mulf %78, %82 : vector<8x8xf32>
    %cst_54 = arith.constant dense<0.000000e+00> : vector<8x8xf32>
    %84 = tpu.matmul %83, %71, %cst_54 {dimension_numbers = #tpu.dot_dimension_numbers<[1], [0], [0], [1], [0, 0, 1, 1], [], []>} : vector<8x8xf32>, vector<8x8xf32>, vector<8x8xf32> -> vector<8x8xf32>
    %c0_55 = arith.constant 0 : index
    %c24_56 = arith.constant 24 : index
    %85 = vector.load %arg24[%c0_55, %c24_56] : memref<8x32xf32, #tpu.memory_space<vmem>>, vector<8x8xf32>
    tpu.vector_store %arg24[%c0_55, %c24_56], %84 {strides = array<i32>} : memref<8x32xf32, #tpu.memory_space<vmem>>, vector<8x8xf32>,
    %c0_57 = arith.constant 0 : index
    %c0_58 = arith.constant 0 : index
    %86 = vector.load %arg24[%c0_57, %c0_58] : memref<8x32xf32, #tpu.memory_space<vmem>>, vector<8x32xf32>
    %c0_59 = arith.constant 0 : index
    %c0_60 = arith.constant 0 : index
    %87 = vector.load %arg10[%c0_59, %c0_60] : memref<32x32xf32, #tpu.memory_space<vmem>>, vector<32x32xf32>
    %cst_61 = arith.constant dense<0.000000e+00> : vector<8x32xf32>
    %88 = tpu.matmul %86, %87, %cst_61 {dimension_numbers = #tpu.dot_dimension_numbers<[1], [0], [0], [1], [0, 0, 1, 1], [], []>} : vector<8x32xf32>, vector<32x32xf32>, vector<8x32xf32> -> vector<8x32xf32>
    %c0_62 = arith.constant 0 : index
    %c0_63 = arith.constant 0 : index
    %89 = vector.load %arg11[%c0_62, %c0_63] : memref<1x32xf32, #tpu.memory_space<vmem>>, vector<1x32xf32>
    %90 = vector.broadcast %89 : vector<1x32xf32> to vector<8x32xf32>
    %91 = arith.addf %88, %90 : vector<8x32xf32>
    %92 = arith.addf %7, %91 : vector<8x32xf32>
    %c0_64 = arith.constant 0 : index
    %c0_65 = arith.constant 0 : index
    %93 = vector.load %arg12[%c0_64, %c0_65] : memref<1x32xf32, #tpu.memory_space<vmem>>, vector<1x32xf32>
    %c0_66 = arith.constant 0 : index
    %c0_67 = arith.constant 0 : index
    %94 = vector.load %arg13[%c0_66, %c0_67] : memref<1x32xf32, #tpu.memory_space<vmem>>, vector<1x32xf32>
    %cst_68 = arith.constant dense<0.000000e+00> : vector<8xf32>
    %95 = vector.multi_reduction <add>, %92, %cst_68 [1] : vector<8x32xf32> to vector<8xf32>
    %96 = vector.shape_cast %95 : vector<8xf32> to vector<8x1xf32>
    %cst_69 = arith.constant 3.200000e+01 : f32
    %97 = vector.broadcast %cst_69 : f32 to vector<8x1xf32>
    %98 = arith.divf %96, %97 : vector<8x1xf32>
    %99 = vector.broadcast %98 : vector<8x1xf32> to vector<8x32xf32>
    %100 = arith.subf %92, %99 : vector<8x32xf32>
    %101 = arith.mulf %100, %100 : vector<8x32xf32>
    %cst_70 = arith.constant dense<0.000000e+00> : vector<8xf32>
    %102 = vector.multi_reduction <add>, %101, %cst_70 [1] : vector<8x32xf32> to vector<8xf32>
    %103 = vector.shape_cast %102 : vector<8xf32> to vector<8x1xf32>
    %cst_71 = arith.constant 3.200000e+01 : f32
    %104 = vector.broadcast %cst_71 : f32 to vector<8x1xf32>
    %105 = arith.divf %103, %104 : vector<8x1xf32>
    %106 = vector.broadcast %98 : vector<8x1xf32> to vector<8x32xf32>
    %107 = arith.subf %92, %106 : vector<8x32xf32>
    %cst_72 = arith.constant 9.99999974E-6 : f32
    %108 = vector.broadcast %cst_72 : f32 to vector<8x1xf32>
    %109 = arith.addf %105, %108 : vector<8x1xf32>
    %110 = math.rsqrt %109 : vector<8x1xf32>
    %111 = vector.broadcast %110 : vector<8x1xf32> to vector<8x32xf32>
    %112 = arith.mulf %107, %111 : vector<8x32xf32>
    %113 = vector.broadcast %93 : vector<1x32xf32> to vector<8x32xf32>
    %114 = arith.mulf %112, %113 : vector<8x32xf32>
    %115 = vector.broadcast %94 : vector<1x32xf32> to vector<8x32xf32>
    %116 = arith.addf %114, %115 : vector<8x32xf32>
    %c0_73 = arith.constant 0 : index
    %c0_74 = arith.constant 0 : index
    %117 = vector.load %arg14[%c0_73, %c0_74] : memref<32x64xf32, #tpu.memory_space<vmem>>, vector<32x64xf32>
    %cst_75 = arith.constant dense<0.000000e+00> : vector<8x64xf32>
    %118 = tpu.matmul %116, %117, %cst_75 {dimension_numbers = #tpu.dot_dimension_numbers<[1], [0], [0], [1], [0, 0, 1, 1], [], []>} : vector<8x32xf32>, vector<32x64xf32>, vector<8x64xf32> -> vector<8x64xf32>
    %c0_76 = arith.constant 0 : index
    %c0_77 = arith.constant 0 : index
    %119 = vector.load %arg15[%c0_76, %c0_77] : memref<1x64xf32, #tpu.memory_space<vmem>>, vector<1x64xf32>
    %120 = vector.broadcast %119 : vector<1x64xf32> to vector<8x64xf32>
    %121 = arith.addf %118, %120 : vector<8x64xf32>
    %cst_78 = arith.constant 0.000000e+00 : f32
    %122 = vector.broadcast %cst_78 : f32 to vector<8x64xf32>
    %123 = arith.maximumf %121, %122 : vector<8x64xf32>
    %c0_79 = arith.constant 0 : index
    %c0_80 = arith.constant 0 : index
    %124 = vector.load %arg16[%c0_79, %c0_80] : memref<64x32xf32, #tpu.memory_space<vmem>>, vector<64x32xf32>
    %cst_81 = arith.constant dense<0.000000e+00> : vector<8x32xf32>
    %125 = tpu.matmul %123, %124, %cst_81 {dimension_numbers = #tpu.dot_dimension_numbers<[1], [0], [0], [1], [0, 0, 1, 1], [], []>} : vector<8x64xf32>, vector<64x32xf32>, vector<8x32xf32> -> vector<8x32xf32>
    %c0_82 = arith.constant 0 : index
    %c0_83 = arith.constant 0 : index
    %126 = vector.load %arg17[%c0_82, %c0_83] : memref<1x32xf32, #tpu.memory_space<vmem>>, vector<1x32xf32>
    %127 = vector.broadcast %126 : vector<1x32xf32> to vector<8x32xf32>
    %128 = arith.addf %125, %127 : vector<8x32xf32>
    %129 = arith.addf %116, %128 : vector<8x32xf32>
    %c0_84 = arith.constant 0 : index
    %c0_85 = arith.constant 0 : index
    %130 = vector.load %arg18[%c0_84, %c0_85] : memref<1x32xf32, #tpu.memory_space<vmem>>, vector<1x32xf32>
    %c0_86 = arith.constant 0 : index
    %c0_87 = arith.constant 0 : index
    %131 = vector.load %arg19[%c0_86, %c0_87] : memref<1x32xf32, #tpu.memory_space<vmem>>, vector<1x32xf32>
    %cst_88 = arith.constant dense<0.000000e+00> : vector<8xf32>
    %132 = vector.multi_reduction <add>, %129, %cst_88 [1] : vector<8x32xf32> to vector<8xf32>
    %133 = vector.shape_cast %132 : vector<8xf32> to vector<8x1xf32>
    %cst_89 = arith.constant 3.200000e+01 : f32
    %134 = vector.broadcast %cst_89 : f32 to vector<8x1xf32>
    %135 = arith.divf %133, %134 : vector<8x1xf32>
    %136 = vector.broadcast %135 : vector<8x1xf32> to vector<8x32xf32>
    %137 = arith.subf %129, %136 : vector<8x32xf32>
    %138 = arith.mulf %137, %137 : vector<8x32xf32>
    %cst_90 = arith.constant dense<0.000000e+00> : vector<8xf32>
    %139 = vector.multi_reduction <add>, %138, %cst_90 [1] : vector<8x32xf32> to vector<8xf32>
    %140 = vector.shape_cast %139 : vector<8xf32> to vector<8x1xf32>
    %cst_91 = arith.constant 3.200000e+01 : f32
    %141 = vector.broadcast %cst_91 : f32 to vector<8x1xf32>
    %142 = arith.divf %140, %141 : vector<8x1xf32>
    %143 = vector.broadcast %135 : vector<8x1xf32> to vector<8x32xf32>
    %144 = arith.subf %129, %143 : vector<8x32xf32>
    %cst_92 = arith.constant 9.99999974E-6 : f32
    %145 = vector.broadcast %cst_92 : f32 to vector<8x1xf32>
    %146 = arith.addf %142, %145 : vector<8x1xf32>
    %147 = math.rsqrt %146 : vector<8x1xf32>
    %148 = vector.broadcast %147 : vector<8x1xf32> to vector<8x32xf32>
    %149 = arith.mulf %144, %148 : vector<8x32xf32>
    %150 = vector.broadcast %130 : vector<1x32xf32> to vector<8x32xf32>
    %151 = arith.mulf %149, %150 : vector<8x32xf32>
    %152 = vector.broadcast %131 : vector<1x32xf32> to vector<8x32xf32>
    %153 = arith.addf %151, %152 : vector<8x32xf32>
    %c0_93 = arith.constant 0 : index
    %c0_94 = arith.constant 0 : index
    %c0_95 = arith.constant 0 : index
    %154 = vector.load %arg20[%c0_93, %c0_94, %c0_95] : memref<1x8x32xf32, #tpu.memory_space<vmem>>, vector<1x8x32xf32>
    %155 = vector.shape_cast %154 : vector<1x8x32xf32> to vector<8x32xf32>
    %156 = vector.shape_cast %153 : vector<8x32xf32> to vector<1x8x32xf32>
    tpu.vector_store %arg20[%c0_93, %c0_94, %c0_95], %156 {strides = array<i32>} : memref<1x8x32xf32, #tpu.memory_space<vmem>>, vector<1x8x32xf32>,
    return
  }
  func.func @transform_0(%arg0: i32, %arg1: i32) -> (i32, i32, i32) {
    %c0_i32 = arith.constant 0 : i32
    %c0_i32_0 = arith.constant 0 : i32
    %c0_i32_1 = arith.constant 0 : i32
    return %arg0, %c0_i32, %c0_i32_0 : i32, i32, i32
  }
  func.func @transform_1(%arg0: i32, %arg1: i32) -> (i32, i32, i32) {
    %c0_i32 = arith.constant 0 : i32
    %c0_i32_0 = arith.constant 0 : i32
    %c0_i32_1 = arith.constant 0 : i32
    return %c0_i32, %arg1, %c0_i32_0 : i32, i32, i32
  }
  func.func @transform_2(%arg0: i32, %arg1: i32) -> (i32, i32) {
    %c0_i32 = arith.constant 0 : i32
    %c0_i32_0 = arith.constant 0 : i32
    %c0_i32_1 = arith.constant 0 : i32
    return %c0_i32, %c0_i32_0 : i32, i32
  }
  func.func @transform_3(%arg0: i32, %arg1: i32) -> (i32, i32) {
    %c0_i32 = arith.constant 0 : i32
    %c0_i32_0 = arith.constant 0 : i32
    %c0_i32_1 = arith.constant 0 : i32
    return %c0_i32, %c0_i32_0 : i32, i32
  }
  func.func @transform_4(%arg0: i32, %arg1: i32) -> (i32, i32) {
    %c0_i32 = arith.constant 0 : i32
    %c0_i32_0 = arith.constant 0 : i32
    %c0_i32_1 = arith.constant 0 : i32
    return %c0_i32, %c0_i32_0 : i32, i32
  }
  func.func @transform_5(%arg0: i32, %arg1: i32) -> (i32, i32) {
    %c0_i32 = arith.constant 0 : i32
    %c0_i32_0 = arith.constant 0 : i32
    %c0_i32_1 = arith.constant 0 : i32
    return %c0_i32, %c0_i32_0 : i32, i32
  }
  func.func @transform_6(%arg0: i32, %arg1: i32) -> (i32, i32) {
    %c0_i32 = arith.constant 0 : i32
    %c0_i32_0 = arith.constant 0 : i32
    %c0_i32_1 = arith.constant 0 : i32
    return %c0_i32, %c0_i32_0 : i32, i32
  }
  func.func @transform_7(%arg0: i32, %arg1: i32) -> (i32, i32) {
    %c0_i32 = arith.constant 0 : i32
    %c0_i32_0 = arith.constant 0 : i32
    %c0_i32_1 = arith.constant 0 : i32
    return %c0_i32, %c0_i32_0 : i32, i32
  }
  func.func @transform_8(%arg0: i32, %arg1: i32) -> (i32, i32) {
    %c0_i32 = arith.constant 0 : i32
    %c0_i32_0 = arith.constant 0 : i32
    %c0_i32_1 = arith.constant 0 : i32
    return %c0_i32, %c0_i32_0 : i32, i32
  }
  func.func @transform_9(%arg0: i32, %arg1: i32) -> (i32, i32) {
    %c0_i32 = arith.constant 0 : i32
    %c0_i32_0 = arith.constant 0 : i32
    %c0_i32_1 = arith.constant 0 : i32
    return %c0_i32, %c0_i32_0 : i32, i32
  }
  func.func @transform_10(%arg0: i32, %arg1: i32) -> (i32, i32) {
    %c0_i32 = arith.constant 0 : i32
    %c0_i32_0 = arith.constant 0 : i32
    %c0_i32_1 = arith.constant 0 : i32
    return %c0_i32, %c0_i32_0 : i32, i32
  }
  func.func @transform_11(%arg0: i32, %arg1: i32) -> (i32, i32) {
    %c0_i32 = arith.constant 0 : i32
    %c0_i32_0 = arith.constant 0 : i32
    %c0_i32_1 = arith.constant 0 : i32
    return %c0_i32, %c0_i32_0 : i32, i32
  }
  func.func @transform_12(%arg0: i32, %arg1: i32) -> (i32, i32) {
    %c0_i32 = arith.constant 0 : i32
    %c0_i32_0 = arith.constant 0 : i32
    %c0_i32_1 = arith.constant 0 : i32
    return %c0_i32, %c0_i32_0 : i32, i32
  }
  func.func @transform_13(%arg0: i32, %arg1: i32) -> (i32, i32) {
    %c0_i32 = arith.constant 0 : i32
    %c0_i32_0 = arith.constant 0 : i32
    %c0_i32_1 = arith.constant 0 : i32
    return %c0_i32, %c0_i32_0 : i32, i32
  }
  func.func @transform_14(%arg0: i32, %arg1: i32) -> (i32, i32) {
    %c0_i32 = arith.constant 0 : i32
    %c0_i32_0 = arith.constant 0 : i32
    %c0_i32_1 = arith.constant 0 : i32
    return %c0_i32, %c0_i32_0 : i32, i32
  }
  func.func @transform_15(%arg0: i32, %arg1: i32) -> (i32, i32) {
    %c0_i32 = arith.constant 0 : i32
    %c0_i32_0 = arith.constant 0 : i32
    %c0_i32_1 = arith.constant 0 : i32
    return %c0_i32, %c0_i32_0 : i32, i32
  }
  func.func @transform_16(%arg0: i32, %arg1: i32) -> (i32, i32) {
    %c0_i32 = arith.constant 0 : i32
    %c0_i32_0 = arith.constant 0 : i32
    %c0_i32_1 = arith.constant 0 : i32
    return %c0_i32, %c0_i32_0 : i32, i32
  }
  func.func @transform_17(%arg0: i32, %arg1: i32) -> (i32, i32) {
    %c0_i32 = arith.constant 0 : i32
    %c0_i32_0 = arith.constant 0 : i32
    %c0_i32_1 = arith.constant 0 : i32
    return %c0_i32, %c0_i32_0 : i32, i32
  }
  func.func @transform_18(%arg0: i32, %arg1: i32) -> (i32, i32, i32) {
    %c0_i32 = arith.constant 0 : i32
    %c0_i32_0 = arith.constant 0 : i32
    return %arg0, %arg1, %c0_i32 : i32, i32, i32
  }
}

</mosaic_0001>

<bundles_post_ra>
// kernel: tpu_custom_call.1
= control target key start
LH: loop header
LB: loop body
LE: loop exit
PB: predicated region body
PF: predicated region fallthrough
CT: control target
= control target key end

     0   :  { %s2176_s0 = inlined_call_operand.hbm [shape: f32[2,8,32], index: 0, kind: input, shape index: {}]   ;;  %s2177_s1 = inlined_call_operand.hbm [shape: f32[1,8,8], index: 1, kind: input, shape index: {}]   ;;  %s2178_s2 = inlined_call_operand.vmem [shape: f32[32,32], index: 2, kind: input, shape index: {}]   ;;  %s2179_s3 = inlined_call_operand.vmem [shape: f32[1,32], index: 3, kind: input, shape index: {}]   ;;  %s2180_s4 = inlined_call_operand.vmem [shape: f32[32,32], index: 4, kind: input, shape index: {}]   ;;  %s2181_s5 = inlined_call_operand.vmem [shape: f32[1,32], index: 5, kind: input, shape index: {}]   ;;  %s2182_s6 = inlined_call_operand.vmem [shape: f32[32,32], index: 6, kind: input, shape index: {}]   ;;  %s2183_s7 = inlined_call_operand.vmem [shape: f32[1,32], index: 7, kind: input, shape index: {}]   ;;  %s2184_s8 = inlined_call_operand.hbm [shape: f32[32,32], index: 8, kind: input, shape index: {}]   ;;  %s2185_s9 = inlined_call_operand.vmem [shape: f32[1,32], index: 9, kind: input, shape index: {}]   ;;  %s2186_s10 = inlined_call_operand.vmem [shape: f32[1,32], index: 10, kind: input, shape index: {}]   ;;  %s2187_s11 = inlined_call_operand.vmem [shape: f32[1,32], index: 11, kind: input, shape index: {}]   ;;  %s2188_s12 = inlined_call_operand.hbm [shape: f32[32,64], index: 12, kind: input, shape index: {}]   ;;  %s2189_s13 = inlined_call_operand.vmem [shape: f32[1,64], index: 13, kind: input, shape index: {}]   ;;  %s2190_s14 = inlined_call_operand.vmem [shape: f32[64,32], index: 14, kind: input, shape index: {}]   ;;  %s2191_s15 = inlined_call_operand.vmem [shape: f32[1,32], index: 15, kind: input, shape index: {}]   ;;  %s2192_s16 = inlined_call_operand.vmem [shape: f32[1,32], index: 16, kind: input, shape index: {}]   ;;  %s2193_s17 = inlined_call_operand.vmem [shape: f32[1,32], index: 17, kind: input, shape index: {}]   ;;  %s2194_s18 = inlined_call_operand.hbm [shape: f32[2,8,32], index: 18, kind: output, shape index: {}]  }
   0x1   :  { %2202 = sst [smem:[#allocation23_spill]] %s2176_s0 }
   0x2   :  { %2203 = sst [smem:[#allocation24_spill]] %s2177_s1 }
   0x3   :  { %2204 = sst [smem:[#allocation25_spill]] %s2178_s2 }
   0x4   :  { %2205 = sst [smem:[#allocation26_spill]] %s2184_s8 }
   0x5   :  { %2206 = sst [smem:[#allocation27_spill]] %s2187_s11 }
   0x6   :  { %2207 = sst [smem:[#allocation28_spill]] %s2188_s12 }
   0x7   :  { %2208 = sst [smem:[#allocation29_spill]] %s2189_s13 }
   0x8   :  { %2209 = sst [smem:[#allocation30_spill]] %s2191_s15 }
   0x9   :  { %2210 = sst [smem:[#allocation31_spill]] %s2192_s16 }
   0xa   :  { %2211 = sst [smem:[#allocation32_spill]] %s2193_s17 }
   0xb   :  { %2212 = sst [smem:[#allocation33_spill]] %s2194_s18 }
   0xc   :  { %23 = vsyncpa [#allocation7], 0 }
   0xd   :  { %25 = vsyncpa [#allocation7 + $0x1], 0 }
   0xe   :  { %26 = vsyncpa [#allocation10], 0 }
   0xf   :  { %27 = vsyncpa [#allocation13], 0 }
  0x10   :  { %28 = vsyncpa [#allocation8], 0 }
  0x11   :  { %30 = vsyncpa [#allocation8 + $0x1], 0  ;;  %s1856_s27 = smov 0   ;;  %s1858_s28 = smov 0  }
  0x12   :  { %s1860_s29 = smov 0   ;;  %s1862_s30 = smov 0  }
  0x13   :  { %s1864_s0 = smov 0   ;;  %s1866_s19 = smov 0  }
  0x14 LB: > { %2213 = sst [smem:[#allocation19_spill]] %s1727_s27  ;;  %s1366_s1 = sadd.s32 4294967295, %s1747_s19   ;;  %s1747_s19 = sphi %s1866_s19, %s36_s19   ;;  %s1743_s0 = sphi %s1864_s0, %s2245_s0   ;;  %s1739_s30 = sphi %s1862_s30, %s2244_s30   ;;  %s1735_s29 = sphi %s1860_s29, %s2243_s29   ;;  %s1731_s28 = sphi %s1858_s28, %s2242_s28   ;;  %s1727_s27 = sphi %s1856_s27, %s2241_s27  }
  0x15   : > { %2214 = sst [smem:[#allocation20_spill]] %s1739_s30  ;;  %s1367_s20 = sadd.s32 4294967294, %s1747_s19  }
  0x16   : > { %p68_p0 = scmp.ne.s32.totalorder %s1731_s28, %s1727_s27  ;;  %p1890_p1 = scmp.eq.s32.totalorder %s1366_s1, 0 }
  0x17   : > { %p1894_p2 = scmp.eq.s32.totalorder %s1366_s1, 1  ;;  %p462_p3 = scmp.eq.s32.totalorder %s1367_s20, 1 }
  0x18   : > { %p1900_p4 = por %p1890_p1, %p68_p0  ;;  %p1368_p5 = scmp.ge.s32.totalorder %s1747_s19, 1 }
  0x19   : > { %p1905_p6 = por %p462_p3, %p68_p0  ;;  %p469_p7 = scmp.lt.s32.totalorder %s1747_s19, 3 }
  0x1a   : > { %s2220_s26 = sld [smem:[#allocation24_spill]]  ;;  %p1372_p9 = scmp.ge.s32.totalorder %s1747_s19, 2 }
  0x1b   : > { %s2218_s23 = scalar_select %p1905_p6, 1, 0 }
  0x1c   : > { %p1913_p8 = pnand %p1368_p5, %p469_p7  ;;  %s1749_s20 = smov [#allocation9]  }
  0x1d   : > { %2219 = sst [smem:[#allocation21_spill]] %s2218_s23  ;;  %s485_s17 = sshll.u32 %s1749_s20, 4  ;;  %s486_s17 = int_to_ptr.vmem [resolvable:$true] %s485_s17 }
  0x1e   : > { %p1419_p10 = pneg %p1913_p8  ;;  %s2222_s8 = sld [smem:[#allocation26_spill]] }
  0x1f   : > { %s1750_s25 = smov [#allocation11]   ;;  %s1751_s16 = smov 128  }
  0x20   : > { %s483_s27 = sshll.u32 %s2220_s26, 4  ;;  %p1925_p11 = pnand %p1419_p10, %p1890_p1  ;;  %s484_s27 = int_to_ptr.hbm [resolvable:$true] %s483_s27 }
  0x21   : > { %s514_s26 = sshll.u32 %s1750_s25, 4  ;;  %s1752_s18 = smov 8   ;;  %s515_s26 = int_to_ptr.vmem [resolvable:$true] %s514_s26 }
  0x22   : > { %1422 = dma.hbm_to_vmem [thread:$0]  (!%p1925_p11), %s484_s27, 128, %s486_s17, [#allocation10]  }
  0x23   : > { %s2224_s12 = sld [smem:[#allocation28_spill]]  ;;  %s1753_s15 = smov [#allocation12]  }
  0x24   : > { %s512_s23 = sshll.u32 %s2222_s8, 4  ;;  %s537_s13 = sshll.u32 %s1753_s15, 4  ;;  %s513_s23 = int_to_ptr.hbm [resolvable:$true] %s512_s23  ;;  %s538_s13 = int_to_ptr.vmem [resolvable:$true] %s537_s13 }
  0x25   : > { %1425 = dma.hbm_to_vmem [thread:$0]  (!%p1925_p11), %s513_s23, 512, %s515_s26, [#allocation10], %s1751_s16, %s1751_s16, %s1752_s18  }
  0x26   : > { %s55_s17 = sadd.s32 1, %s1735_s29  ;;  %s48_s27 = sadd.s32 1, %s1743_s0 }
  0x27   : > { %p62_p12 = scmp.ne.s32.totalorder %s1735_s29, %s1731_s28  ;;  %p50_p13 = scmp.ge.s32.totalorder %s48_s27, 2 }
  0x28   : > { %p63_p0 = scmp.eq.s32.totalorder %s1747_s19, 0  ;;  %p1440_p5 = scmp.lt.s32.totalorder %s1747_s19, 2 }
  0x29   : > { %s535_s30 = sshll.u32 %s2224_s12, 4  ;;  %p1945_p3 = por %p1894_p2, %p62_p12  ;;  %s536_s30 = int_to_ptr.hbm [resolvable:$true] %s535_s30 }
  0x2a   : > { %1428 = dma.hbm_to_vmem [thread:$0]  (!%p1925_p11), %s536_s30, 512, %s538_s13, [#allocation13], %s1751_s16, %s1751_s16, %s1752_s18  }
  0x2b   : > { %s2225_s23 = scalar_select %p1945_p3, 1, 0 }
  0x2c   : > { %s2247_s27 = smov (%p50_p13, %s48_s27), 0  ;;  %p1952_p7 = por %p63_p0, %p62_p12 }
  0x2d   : > { %2226 = sst [smem:[#allocation22_spill]] %s2225_s23  ;;  %s566_s13 = sand.u32 1, %s1735_s29  }
  0x2e   : > { %s52_s15 = ssub.s32 %s1743_s0, %s2247_s27  ;;  %s1373_s30 = sshll.u32 %s566_s13, 3 }
  0x2f   : > { %p53_p10 = scmp.eq.s32.totalorder %s52_s15, 0  ;;  %s1374_s24 = sshll.u32 %s1743_s0, 3 }
  0x30   : > { %s2228_s16 = sld [smem:[#allocation23_spill]]  ;;  %s570_s20 = scalar_lea.vmem [#allocation6], %s1373_s30 }
  0x31   : > { %s1961_s22 = scalar_select %p53_p10, %s1735_s29, %s55_s17  }
  0x32   : > { %s578_s12 = sshll.u32 %s570_s20, 4  ;;  %p1430_p2 = pnand %p1440_p5, %p1952_p7  ;;  %s579_s12 = int_to_ptr.vmem [resolvable:$true] %s578_s12 }
  0x33   : > { %s567_s11 = scalar_lea.sflag [#allocation7], %s566_s13  ;;  %s1973_s17 = sand.u32 (!%p1913_p8), 1, %s1731_s28  }
  0x34   : > { %587 = sbr.rel (%p1913_p8) target bundleno = 1926 (0x786), region = 92  ;;  %s1376_s15 = sshll.u32 (!%p1913_p8), %s1973_s17, 3 }
  0x35   : > { %s590_s30 = scalar_lea.sflag (!%p1913_p8), [#allocation7], %s1973_s17 }
  0x36   : > { %s574_s18 = scalar_lea.hbm %s2228_s16, %s1374_s24  ;;  %s593_s24 = scalar_lea.vmem (!%p1913_p8), [#allocation6], %s1376_s15 }
  0x37   : > { %s576_s23 = sshll.u32 %s574_s18, 4  ;;  %s577_s23 = int_to_ptr.hbm [resolvable:$true] %s576_s23 }
  0x38   : > { %1432 = dma.hbm_to_vmem [thread:$0]  (!%p1430_p2), %s577_s23, 128, %s579_s12, %s567_s11  }
  0x39   : > { %1710 = dma.done.wait (%p1900_p4), %s590_s30, 128  }
  0x3a   : > { %1712 = vsyncadd (%p1900_p4), %s590_s30, 4294967168 }
  0x3b   : > { %1714 = dma.done.wait (%p1890_p1), [#allocation10], 640  }
  0x3c   : > { %1716 = vsyncadd (%p1890_p1), [#allocation10], 4294966656 }
  0x3d   : > { %1718 = dma.done.wait (%p1890_p1), [#allocation13], 512  }
  0x3e   : > { %1720 = vsyncadd (%p1890_p1), [#allocation13], 4294966784  ;;  %v670_v0 = vld [vmem:[%s2180_s4 + $0x18] sm:$0xff]  ;;  %s2229_s2 = sld [smem:[#allocation25_spill]]  ;;  %v669_v2 = vld [vmem:[%s2180_s4 + $0x10] sm:$0xff]  ;;  %vm675_vm0 = vcmask 261120  }
  0x3f   : > { %691 = vmatpush.msra.mxu1 %v670_v0  ;;  %v668_v4 = vld [vmem:[%s2180_s4 + $0x8] sm:$0xff]  ;;  %v667_v6 = vld [vmem:[%s2180_s4] sm:$0xff]  ;;  %vm770_vm1 = vcmask 64512   ;;  %s1754_s25 = smov 104   ;;  %s1755_s26 = smov 112   ;;  %v766_v24 = vld [vmem:[#allocation9] sm:$0xff] }
  0x40   : > { %v2015_v8 = vld [vmem:[%s593_s24] sm:$0xff]  ;;  %s1756_s21 = smov 120   ;;  %v703_v28 = vld [vmem:[%s2182_s6 + $0x18] sm:$0xff]  ;;  %v702_v29 = vld [vmem:[%s2182_s6 + $0x10] sm:$0xff]  ;;  %s1757_s13 = smov 16   ;;  %vm907_vm2 = vcmask 130112  }
  0x41   : > { %692 = vmatpush.msra.mxu1 %v669_v2  ;;  %v1505_v9 = vld [vmem:[%s2181_s5] ss:$0 sm:$0xff]  ;;  %v701_v30 = vld [vmem:[%s2182_s6 + $0x8] sm:$0xff]  ;;  %vm984_vm3 = vcmask 195712   ;;  %vm1061_vm4 = vcmask 261312   ;;  %s2230_s18 = sld [smem:[#allocation27_spill]] }
  0x42   : > { %v1506_v12 = vld [vmem:[%s2179_s3] ss:$0 sm:$0xff]  ;;  %vm1179_vm9 = vcmask 523264   ;;  %s2233_s16 = sld [smem:[#allocation20_spill]]  ;;  %s1238_s20 = scalar_lea.sflag [#allocation8], %s1973_s17 }
  0x43   : > { %693 = vmatpush.msra.mxu1 %v668_v4  ;;  %v700_v31 = vld [vmem:[%s2182_s6] sm:$0xff]  ;;  %s2234_s11 = sld [smem:[#allocation31_spill]] }
  0x44   : > { %v735_v1 = vld [vmem:[%s2229_s2 + $0x18] sm:$0xff]  ;;  %v734_v3 = vld [vmem:[%s2229_s2 + $0x10] sm:$0xff]  ;;  %v733_v5 = vld [vmem:[%s2229_s2 + $0x8] sm:$0xff]  ;;  %s2235_s23 = sld [smem:[#allocation33_spill]] }
  0x45   : > { %756 = vmatpush.msra.mxu2 %v735_v1  ;;  %v732_v7 = vld [vmem:[%s2229_s2] sm:$0xff]  ;;  %694 = vmatpush.msra.mxu1 %v667_v6 }
  0x46   : > { %1381 = vmatmul.msk.f32.vlgmr.msra.gmra.mxu1 %vm675_vm0, %v2015_v8  ;;  %v1507_v46 = vld [vmem:[%s2183_s7] ss:$0 sm:$0xff] }
  0x47   : > { %757 = vmatpush.msra.mxu2 %v734_v3  ;;  %720 = vmatpush.msrb.mxu1 %v703_v28 }
  0x49   : > { %758 = vmatpush.msra.mxu2 %v733_v5  ;;  %721 = vmatpush.msrb.mxu1 %v702_v29  ;;  %v1508_v29 = vld [vmem:[%s2185_s9] ss:$0 sm:$0xff] }
  0x4b   : > { %759 = vmatpush.msra.mxu2 %v732_v7  ;;  %722 = vmatpush.msrb.mxu1 %v701_v30 }
  0x4c   : > { %1383 = vmatmul.msk.f32.vlgmr.msra.gmra.mxu2 %vm675_vm0, %v2015_v8 }
  0x4d   : > { %723 = vmatpush.msrb.mxu1 %v700_v31 }
  0x4e   : > { %1382 = vmatmul.msk.f32.vlgmr.msrb.gmra.mxu1 %vm675_vm0, %v2015_v8 }
  0xc3   : > { %v696_v10 = vpop.f32.mrf.mxu1 }
  0xc4   : > { %v697_v11 = vadd.f32 %v1505_v9, %v696_v10 }
  0xc6   : > { %699 = vst.msk [vmem:[#allocation2] sm:$0xff] %vm675_vm0, %v697_v11 }
  0xcb   : > { %v725_v47 = vpop.f32.mrf.mxu1 }
  0xcc   : > { %v726_v48 = vadd.f32 %v1507_v46, %v725_v47  ;;  %v1137_v46 = vld [vmem:[#allocation12 + $0x10] sm:$0xff]  ;;  %v1136_v47 = vld [vmem:[#allocation12 + $0x8] sm:$0xff] }
  0xcd   : > { %v987_v16 = vld [vmem:[#allocation2] sm:$0xff] }
  0xce   : > { %993 = vrot.lane.b32.xlu2 %v987_v16, %s1754_s25  ;;  %916 = vrot.lane.b32.xlu0 %v987_v16, %s1755_s26  ;;  %728 = vst.msk [vmem:[#allocation3] sm:$0xff] %vm675_vm0, %v726_v48  ;;  %v1135_v48 = vld [vmem:[#allocation12] sm:$0xff] }
  0xcf   : > { %v761_v13 = vpop.f32.mrf.mxu2  ;;  %839 = vrot.lane.b32.xlu1 %v987_v16, %s1756_s21  ;;  %1384 = vmatpush.xpose.msk.msra.mxu3 %vm770_vm1, %v987_v16 }
  0xd0   : > { %v762_v14 = vadd.f32 %v1506_v12, %v761_v13 }
  0xd2   : > { %v764_v15 = vmul.f32 0.35355338, %v762_v14 }
  0xd4   : > { %765 = vst.msk [vmem:[#allocation4] sm:$0xff] %vm675_vm0, %v764_v15 }
  0xd5   : > { %v769_v49 = vld [vmem:[#allocation3] sm:$0xff] }
  0xd6   : > { %826 = vmatpush.msrb.mxu3 %v769_v49 }
  0xdb   : > { %v986_v17 = vld [vmem:[#allocation4] sm:$0xff] }
  0xdc   : > { %990 = vrot.lane.b32.xlu2 %v986_v17, %s1754_s25  ;;  %913 = vrot.lane.b32.xlu0 %v986_v17, %s1755_s26 }
  0xdd   : > { %836 = vrot.lane.b32.xlu1 %v986_v17, %s1756_s21  ;;  %1385 = vmatmul.msk.f32.vlgmr.msra.gmra.mxu3 %vm770_vm1, %v986_v17 }
 0x128   : > { %v994_v20 = vpop.permute.xlu2 %993 }
 0x136   : > { %v991_v23 = vpop.permute.xlu2 %990 }
 0x140   : > { %v917_v18 = vpop.permute.xlu0 %916 }
 0x141   : > { %v840_v19 = vpop.permute.xlu1 %839  ;;  %1390 = vmatpush.xpose.msk.msrb.mxu2 %vm770_vm1, %v917_v18 }
 0x142   : > { %1387 = vmatpush.xpose.msk.msra.mxu0 %vm770_vm1, %v840_v19 }
 0x146   : > { %1393 = vmatpush.xpose.msk.msrb.mxu0 %vm770_vm1, %v994_v20 }
 0x14e   : > { %v914_v21 = vpop.permute.xlu0 %913 }
 0x14f   : > { %v837_v22 = vpop.permute.xlu1 %836  ;;  %1391 = vmatmul.msk.f32.vlgmr.msrb.gmra.mxu2 %vm770_vm1, %v914_v21  ;;  %v1067_v21 = vld [vmem:[#allocation11 + $0x18] sm:$0xff] }
 0x150   : > { %1388 = vmatmul.msk.f32.vlgmr.msra.gmra.mxu0 %vm770_vm1, %v837_v22  ;;  %v1066_v22 = vld [vmem:[#allocation11 + $0x10] sm:$0xff]  ;;  %1087 = vmatpush.msra.mxu2 %v1067_v21 }
 0x152   : > { %1088 = vmatpush.msra.mxu2 %v1066_v22 }
 0x158   : > { %1394 = vmatmul.msk.f32.vlgmr.msrb.gmra.mxu0 %vm770_vm1, %v991_v23  ;;  %v1065_v23 = vld [vmem:[#allocation11 + $0x8] sm:$0xff] }
 0x159   : > { %1089 = vmatpush.msra.mxu2 %v1065_v23 }
 0x160   : > { %v794_v25 = vpop.f32.mrf.mxu3 }
 0x161   : > { %v795_v26 = vadd.f32 %v794_v25, %v766_v24 }
 0x163   : > { %v797_v27 = vsel %vm770_vm1, %v795_v26, -inf }
 0x164   : > { %798 = vmax.xlane.f32.xlu0 %v797_v27 }
 0x1cd   : > { %v862_v32 = vpop.f32.mrf.mxu0 }
 0x1ce   : > { %v863_v33 = vadd.f32 %v862_v32, %v766_v24 }
 0x1d0   : > { %v865_v34 = vsel %vm770_vm1, %v863_v33, -inf }
 0x1d1   : > { %866 = vmax.xlane.f32.xlu1 %v865_v34  ;;  %v1760_v34 = vmov 32.0  }
 0x1d2   : > { %v939_v35 = vpop.f32.mrf.mxu2 }
 0x1d3   : > { %v940_v36 = vadd.f32 %v939_v35, %v766_v24 }
 0x1d5   : > { %v942_v37 = vsel %vm770_vm1, %v940_v36, -inf  ;;  %v1016_v38 = vpop.f32.mrf.mxu0 }
 0x1d6   : > { %943 = vmax.xlane.f32.xlu2 %v942_v37  ;;  %v1017_v41 = vadd.f32 %v1016_v38, %v766_v24  ;;  %v1064_v24 = vld [vmem:[#allocation11] sm:$0xff] }
 0x1d7   : > { %v799_v39 = vpop.xlane.xlu0 %798  ;;  %1090 = vmatpush.msra.mxu2 %v1064_v24 }
 0x1d8   : > { %v800_v40 = vsub.f32 %v795_v26, %v799_v39  ;;  %v1019_v43 = vsel %vm770_vm1, %v1017_v41, -inf }
 0x1da   : > { %v801_v42 = vmul.f32 1.442695, %v800_v40 }
 0x1dc   : > { %1515 = vpow2.f32 %v801_v42 }
 0x1de   : > { %1020 = vmax.xlane.f32.xlu2 %v1019_v43 }
 0x1e2   : > { %v1516_v44 = vpop.eup %1515 }
 0x1e3   : > { %v803_v45 = vsel %vm770_vm1, %v1516_v44, 0.0 }
 0x1e4   : > { %804 = vadd.xlane.f32.xlu0 %v803_v45  ;;  %v1138_v45 = vld [vmem:[#allocation12 + $0x18] sm:$0xff] }
 0x244   : > { %v867_v50 = vpop.xlane.xlu1 %866 }
 0x245   : > { %v868_v51 = vsub.f32 %v863_v33, %v867_v50  ;;  %v1173_v50 = vld [vmem:[%s2190_s14 + $0x30] sm:$0xff] }
 0x247   : > { %v869_v52 = vmul.f32 1.442695, %v868_v51  ;;  %v1172_v51 = vld [vmem:[%s2190_s14 + $0x28] sm:$0xff] }
 0x249   : > { %1517 = vpow2.f32 %v869_v52  ;;  %v944_v53 = vpop.xlane.xlu2 %943 }
 0x24a   : > { %v945_v54 = vsub.f32 %v940_v36, %v944_v53 }
 0x24c   : > { %v946_v55 = vmul.f32 1.442695, %v945_v54  ;;  %v1171_v54 = vld [vmem:[%s2190_s14 + $0x20] sm:$0xff] }
 0x24e   : > { %1519 = vpow2.f32 %v946_v55 }
 0x24f   : > { %v1518_v56 = vpop.eup %1517 }
 0x250   : > { %v871_v57 = vsel %vm770_vm1, %v1518_v56, 0.0 }
 0x251   : > { %872 = vadd.xlane.f32.xlu1 %v871_v57  ;;  %v1021_v58 = vpop.xlane.xlu2 %1020 }
 0x252   : > { %v1022_v59 = vsub.f32 %v1017_v41, %v1021_v58 }
 0x254   : > { %v1520_v60 = vpop.eup %1519  ;;  %v1023_v61 = vmul.f32 1.442695, %v1022_v59 }
 0x255   : > { %v948_v62 = vsel %vm770_vm1, %v1520_v60, 0.0 }
 0x256   : > { %1521 = vpow2.f32 %v1023_v61  ;;  %949 = vadd.xlane.f32.xlu2 %v948_v62 }
 0x257   : > { %v805_v63 = vpop.xlane.xlu0 %804 }
 0x258   : > { %1523 = vrcp.f32 %v805_v63  ;;  %v1509_v63 = vld [vmem:[%s2186_s10] ss:$0 sm:$0xff] }
 0x25c   : > { %v1522_v0 = vpop.eup %1521 }
 0x25d   : > { %v1025_v1 = vsel %vm770_vm1, %v1522_v0, 0.0 }
 0x25e   : > { %v1524_v2 = vpop.eup %1523  ;;  %1026 = vadd.xlane.f32.xlu0 %v1025_v1 }
 0x25f   : > { %v807_v3 = vmul.f32 %v1524_v2, %v1516_v44  ;;  %v1510_v2 = vld [vmem:[%s2230_s18] ss:$0 sm:$0xff]  ;;  %s1400_s18 = sshll.u32 %s2233_s16, 3 }
 0x260   : > { %s1249_s8 = scalar_lea.hbm %s2235_s23, %s1400_s18 }
 0x261   : > { %1386 = vmatmul.msk.f32.vlgmr.msrb.gmra.mxu3 %vm770_vm1, %v807_v3  ;;  %s1253_s2 = sshll.u32 %s1249_s8, 4  ;;  %s1254_s2 = int_to_ptr.hbm [resolvable:$true] %s1253_s2 }
 0x262   : > { %s1671_s30 = sshra.s32 %s1254_s2, 4  ;;  %s1672_s30 = int_to_ptr.hbm [resolvable:$true] %s1671_s30 }
 0x263   : > { %s1673_s18 = scalar_lea.hbm %s1672_s30, 8  ;;  %p1678_p11 = scmp.lt.s32.totalorder %s1672_s30, %s2235_s23 }
 0x264   : > { %p1674_p1 = scmp.ne.s32.totalorder %s1672_s30, %s1673_s18 }
 0x266   : > { %p1675_p4 = pnand %p1674_p1, %p1945_p3 }
 0x268   : > { %p1676_p8 = pneg %p1675_p4 }
 0x26a   : > { %877 = vrot.lane.b32.xlu1 %v769_v49, %s1756_s21  ;;  %s2232_s21 = sld [smem:[#allocation30_spill]] }
 0x26e   : > { %954 = vrot.lane.b32.xlu2 %v769_v49, %s1755_s26  ;;  %s1759_s26 = smov 24  }
 0x272   : > { %1031 = vrot.lane.b32.xlu0 %v769_v49, %s1754_s25  ;;  %s1758_s25 = smov 8   ;;  %v1174_v49 = vld [vmem:[%s2190_s14 + $0x38] sm:$0xff] }
 0x273   : > { %1191 = vmatpush.msra.mxu0 %v1174_v49 }
 0x275   : > { %1192 = vmatpush.msra.mxu0 %v1173_v50 }
 0x277   : > { %1193 = vmatpush.msra.mxu0 %v1172_v51 }
 0x279   : > { %1194 = vmatpush.msra.mxu0 %v1171_v54 }
 0x2c4   : > { %v873_v6 = vpop.xlane.xlu1 %872 }
 0x2c9   : > { %v950_v4 = vpop.xlane.xlu2 %949 }
 0x2ca   : > { %1525 = vrcp.f32 %v950_v4 }
 0x2cb   : > { %1527 = vrcp.f32 %v873_v6  ;;  %v1168_v6 = vld [vmem:[%s2190_s14 + $0x8] sm:$0xff] }
 0x2d0   : > { %v1526_v5 = vpop.eup %1525 }
 0x2d1   : > { %v952_v7 = vmul.f32 %v1526_v5, %v1520_v60  ;;  %v955_v9 = vpop.permute.xlu2 %954  ;;  %v1027_v10 = vpop.xlane.xlu0 %1026  ;;  %v1169_v5 = vld [vmem:[%s2190_s14 + $0x10] sm:$0xff] }
 0x2d2   : > { %975 = vmatpush.msra.mxu3 %v955_v9  ;;  %v1528_v11 = vpop.eup %1527  ;;  %1529 = vrcp.f32 %v1027_v10 }
 0x2d3   : > { %1392 = vmatmul.msk.f32.vlgmr.msra.gmra.mxu3 %vm770_vm1, %v952_v7  ;;  %v875_v12 = vmul.f32 %v1528_v11, %v1518_v56  ;;  %1531 = vrcp.f32 %v1760_v34  ;;  %v1170_v56 = vld [vmem:[%s2190_s14 + $0x18] sm:$0xff]  ;;  %v1167_v7 = vld [vmem:[%s2190_s14] sm:$0xff] }
 0x2d4   : > { %1158 = vmatpush.msrb.mxu3 %v1138_v45  ;;  %1195 = vmatpush.msra.mxu0 %v1170_v56 }
 0x2d6   : > { %1159 = vmatpush.msrb.mxu3 %v1137_v46  ;;  %1196 = vmatpush.msra.mxu0 %v1169_v5 }
 0x2d8   : > { %v1530_v14 = vpop.eup %1529  ;;  %1160 = vmatpush.msrb.mxu3 %v1136_v47  ;;  %1197 = vmatpush.msra.mxu0 %v1168_v6 }
 0x2d9   : > { %v1029_v15 = vmul.f32 %v1530_v14, %v1522_v0  ;;  %v1532_v35 = vpop.eup %1531 }
 0x2da   : > { %v1102_v36 = vmul.f32 32.0, %v1532_v35  ;;  %vm1106_vm5 = vweird.f32 %v1532_v35  ;;  %1161 = vmatpush.msrb.mxu3 %v1135_v48  ;;  %1198 = vmatpush.msra.mxu0 %v1167_v7 }
 0x2dc   : > { %v878_v13 = vpop.permute.xlu1 %877  ;;  %v1103_v37 = vsub.f32 1.0, %v1102_v36 }
 0x2dd   : > { %898 = vmatpush.msra.mxu1 %v878_v13  ;;  %v1512_v13 = vld [vmem:[%s2232_s21] ss:$0 sm:$0xff]  ;;  %s661_s21 = scalar_lea.vmem [#allocation14], %s1376_s15  ;;  %s1677_s15 = scalar_lea.hbm %s2235_s23, 16 }
 0x2de   : > { %1389 = vmatmul.msk.f32.vlgmr.msra.gmra.mxu1 %vm770_vm1, %v875_v12  ;;  %v1104_v38 = vmul.f32 %v1532_v35, %v1103_v37  ;;  %s1251_s16 = sshll.u32 %s661_s21, 4  ;;  %p1679_p12 = scmp.lt.s32.totalorder %s1677_s15, %s1673_s18  ;;  %s1252_s16 = int_to_ptr.vmem [resolvable:$true] %s1251_s16 }
 0x2e0   : > { %v1105_v39 = vadd.f32 %v1532_v35, %v1104_v38  ;;  %p1680_p13 = por %p1679_p12, %p1678_p11 }
 0x2e2   : > { %v2083_v40 = vsel %vm1106_vm5, %v1532_v35, %v1105_v39  ;;  %p1681_p0 = pnand %p1680_p13, %p1676_p8 }
 0x2e4   : > { %v828_v16 = vpop.f32.mrf.mxu3  ;;  %v1032_v17 = vpop.permute.xlu0 %1031 }
 0x2e5   : > { %831 = vst.msk [vmem:[#allocation5] sm:$0xff] %vm770_vm1, %v828_v16  ;;  %1052 = vmatpush.msrb.mxu1 %v1032_v17 }
 0x2e6   : > { %1395 = vmatmul.msk.f32.vlgmr.msrb.gmra.mxu1 %vm770_vm1, %v1029_v15 }
 0x356   : > { %v977_v18 = vpop.f32.mrf.mxu3 }
 0x357   : > { %981 = vrot.lane.b32.xlu0 %v977_v18, %s1757_s13  ;;  %s2231_s13 = sld [smem:[#allocation29_spill]] }
 0x35b   : > { %v900_v19 = vpop.f32.mrf.mxu1 }
 0x35c   : > { %904 = vrot.lane.b32.xlu1 %v900_v19, %s1758_s25 }
 0x35d   : > { %v1511_v9 = vld [vmem:[%s2231_s13] ss:$0 sm:$0xff] }
 0x363   : > { %v1054_v20 = vpop.f32.mrf.mxu1 }
 0x364   : > { %1058 = vrot.lane.b32.xlu2 %v1054_v20, %s1759_s26  ;;  %s2237_s26 = sld [smem:[#allocation32_spill]] }
 0x36a   : > { %v1514_v35 = vld [vmem:[%s2237_s26] ss:$0 sm:$0xff] }
 0x3be   : > { %v1059_v27 = vpop.permute.xlu2 %1058 }
 0x3c9   : > { %v982_v26 = vpop.permute.xlu0 %981 }
 0x3ce   : > { %v905_v25 = vpop.permute.xlu1 %904 }
 0x3cf   : > { %908 = vst.msk [vmem:[#allocation5] sm:$0xff] %vm907_vm2, %v905_v25 }
 0x3d0   : > { %985 = vst.msk [vmem:[#allocation5] sm:$0xff] %vm984_vm3, %v982_v26 }
 0x3d1   : > { %1062 = vst.msk [vmem:[#allocation5] sm:$0xff] %vm1061_vm4, %v1059_v27 }
 0x3d8   : > { %v1063_v28 = vld [vmem:[#allocation5] sm:$0xff] }
 0x3d9   : > { %1396 = vmatmul.msk.f32.vlgmr.msra.gmra.mxu2 %vm675_vm0, %v1063_v28 }
 0x45c   : > { %v1092_v30 = vpop.f32.mrf.mxu2 }
 0x45d   : > { %v1093_v31 = vadd.f32 %v1508_v29, %v1092_v30 }
 0x45f   : > { %v1095_v32 = vadd.f32 %v1093_v31, %v2015_v8 }
 0x461   : > { %v1098_v33 = vsel %vm675_vm0, %v1095_v32, 0.0 }
 0x462   : > { %1099 = vadd.xlane.f32.xlu1 %v1098_v33 }
 0x4d5   : > { %v1100_v41 = vpop.xlane.xlu1 %1099 }
 0x4d6   : > { %v1108_v42 = vmul.f32 %v2083_v40, %v1100_v41 }
 0x4d8   : > { %v1109_v43 = vsub.f32 %v1095_v32, %v1108_v42  ;;  %v1513_v32 = vld [vmem:[%s2234_s11] ss:$0 sm:$0xff] }
 0x4da   : > { %v1110_v44 = vmul.f32 %v1109_v43, %v1109_v43 }
 0x4dc   : > { %v1111_v8 = vsel %vm675_vm0, %v1110_v44, 0.0 }
 0x4dd   : > { %1112 = vadd.xlane.f32.xlu0 %v1111_v8 }
 0x550   : > { %v1113_v52 = vpop.xlane.xlu0 %1112 }
 0x551   : > { %v1114_v53 = vmul.f32 %v1113_v52, %v2083_v40 }
 0x553   : > { %v1115_v55 = vadd.f32 1e-05, %v1114_v53 }
 0x555   : > { %1533 = vrsqrt.f32 %v1115_v55  ;;  %vm1122_vm7 = vweird.f32 %v1115_v55 }
 0x55b   : > { %v1534_v57 = vpop.eup %1533 }
 0x55c   : > { %v1117_v58 = vmul.f32 %v1534_v57, %v1115_v55  ;;  %vm1123_vm6 = vweird.f32 %v1534_v57 }
 0x55d   : > { %vm1124_vm8 = vmor %vm1122_vm7, %vm1123_vm6 }
 0x55e   : > { %v1118_v59 = vmul.f32 %v1534_v57, %v1117_v58 }
 0x560   : > { %v1119_v60 = vmul.f32 0.5, %v1118_v59 }
 0x562   : > { %v1120_v61 = vsub.f32 1.5, %v1119_v60 }
 0x564   : > { %v1121_v62 = vmul.f32 %v1534_v57, %v1120_v61 }
 0x566   : > { %v1125_v0 = vsel %vm1124_vm8, %v1534_v57, %v1121_v62 }
 0x567   : > { %v1126_v1 = vmul.f32 %v1125_v0, %v1109_v43 }
 0x569   : > { %v1130_v3 = vmul.f32 %v1509_v63, %v1126_v1 }
 0x56b   : > { %v1134_v4 = vadd.f32 %v1510_v2, %v1130_v3 }
 0x56d   : > { %1397 = vmatmul.msk.f32.vlgmr.msrb.gmra.mxu3 %vm675_vm0, %v1134_v4 }
 0x5f0   : > { %v1163_v10 = vpop.f32.mrf.mxu3 }
 0x5f1   : > { %v1164_v11 = vadd.f32 %v1511_v9, %v1163_v10 }
 0x5f3   : > { %v1166_v12 = vmax.f32 %v1164_v11, 0.0 }
 0x5f5   : > { %1398 = vmatmul.msk.f32.vlgmr.msra.gmra.mxu0 %vm1179_vm9, %v1166_v12 }
 0x672   : > { %v1200_v14 = vpop.f32.mrf.mxu0 }
 0x673   : > { %v1201_v15 = vadd.f32 %v1512_v13, %v1200_v14 }
 0x675   : > { %v1203_v16 = vadd.f32 %v1201_v15, %v1134_v4 }
 0x677   : > { %v1206_v17 = vsel %vm675_vm0, %v1203_v16, 0.0 }
 0x678   : > { %1207 = vadd.xlane.f32.xlu2 %v1206_v17 }
 0x6eb   : > { %v1208_v18 = vpop.xlane.xlu2 %1207 }
 0x6ec   : > { %v1209_v19 = vmul.f32 %v1208_v18, %v2083_v40 }
 0x6ee   : > { %v1210_v20 = vsub.f32 %v1203_v16, %v1209_v19 }
 0x6f0   : > { %v1211_v21 = vmul.f32 %v1210_v20, %v1210_v20 }
 0x6f2   : > { %v1212_v22 = vsel %vm675_vm0, %v1211_v21, 0.0 }
 0x6f3   : > { %1213 = vadd.xlane.f32.xlu1 %v1212_v22 }
 0x766   : > { %v1214_v23 = vpop.xlane.xlu1 %1213 }
 0x767   : > { %v1215_v24 = vmul.f32 %v1214_v23, %v2083_v40 }
 0x769   : > { %v1216_v25 = vadd.f32 1e-05, %v1215_v24 }
 0x76b   : > { %1535 = vrsqrt.f32 %v1216_v25  ;;  %vm1223_vm11 = vweird.f32 %v1216_v25 }
 0x771   : > { %v1536_v26 = vpop.eup %1535 }
 0x772   : > { %v1218_v27 = vmul.f32 %v1536_v26, %v1216_v25  ;;  %vm1224_vm10 = vweird.f32 %v1536_v26 }
 0x773   : > { %vm1225_vm12 = vmor %vm1223_vm11, %vm1224_vm10 }
 0x774   : > { %v1219_v28 = vmul.f32 %v1536_v26, %v1218_v27 }
 0x776   : > { %v1220_v29 = vmul.f32 0.5, %v1219_v28 }
 0x778   : > { %v1221_v30 = vsub.f32 1.5, %v1220_v29 }
 0x77a   : > { %v1222_v31 = vmul.f32 %v1536_v26, %v1221_v30 }
 0x77c   : > { %v1226_v33 = vsel %vm1225_vm12, %v1536_v26, %v1222_v31 }
 0x77d   : > { %v1227_v34 = vmul.f32 %v1226_v33, %v1210_v20 }
 0x77f   : > { %v1231_v36 = vmul.f32 %v1513_v32, %v1227_v34 }
 0x781   : > { %v1235_v37 = vadd.f32 %v1514_v35, %v1231_v36 }
 0x783   : > { %1236 = vst.msk [vmem:[%s661_s21] sm:$0xff] %vm675_vm0, %v1235_v37 }
 0x784   : > { %1684 = shalt.err (!%p1681_p0)
}
 0x785   : > { %1417 = dma.vmem_to_hbm [thread:$0]  (%p1945_p3), %s1252_s16, 128, %s1254_s2, %s1238_s20  }
 0x786 PF: > { %s2238_s17 = sld [smem:[#allocation19_spill]]  ;;  %p1434_p5 = pnand %p1372_p9, %p1905_p6 }
 0x788   : > { %p1435_p7 = pneg %p1434_p5 }
 0x78c   : > { %s1265_s25 = sand.u32 1, %s2238_s17  }
 0x78d   : > { %s1266_s26 = scalar_lea.sflag [#allocation8], %s1265_s25 }
 0x78e   : > { %1722 = dma.done.wait (%p1435_p7), %s1266_s26, 128  }
 0x78f   : > { %1724 = vsyncadd (%p1435_p7), %s1266_s26, 4294967168  ;;  %s36_s19 = sadd.s32 1, %s1747_s19   ;;  %s2240_s2 = smov %s2247_s27 }
 0x790   : > { %p33_p10 = scmp.ge.s32.totalorder %s36_s19, 4   ;;  %s2241_s27 = smov %s1731_s28 }
 0x791   : > { %s2242_s28 = smov %s1735_s29  ;;  %s2243_s29 = smov %s1961_s22 }
 0x792   : > { %s2244_s30 = smov %s1743_s0  ;;  %s2245_s0 = smov %s2240_s2 }
 0x793   :  { %35 = sbr.rel (!%p33_p10) target bundleno = 20 (0x14), region = 155 }
 0x798   :  { %1272 = vsyncpa [#allocation7], 1 }
 0x799   :  { %1274 = vsyncpa [#allocation7 + $0x1], 1 }
 0x79a   :  { %1275 = vsyncpa [#allocation10], 1 }
 0x79b   :  { %1276 = vsyncpa [#allocation13], 1 }
 0x79c   :  { %1277 = vsyncpa [#allocation8], 1 }
 0x79d   :  { %1279 = vsyncpa [#allocation8 + $0x1], 1 }

</bundles_post_ra>
